<compile_context>
chip_gen: v6e
topology: v6e:2x2x1
jax: 0.10.0
libtpu: 0.0.40
codegen_flags: <defaults>
</compile_context>

<pallas_src>
import functools

import jax
import jax.numpy as jnp
from jax import lax
from jax.experimental import pallas as pl
from jax.experimental.pallas import tpu as pltpu


def _round_up(x, m):
    return ((x + m - 1) // m) * m


def _vmem_limit_bytes(default=48 << 20):
    """Generation-aware scoped-VMEM limit.

    v5e/v6e have 128 MiB physical VMEM (16/32 MiB default scoped limit),
    v7x only 64 MiB physical -- take ~3/4 of the physical capacity when it
    can be queried, otherwise a 48 MiB value that is safe on all of them.
    """
    try:
        info = pltpu.get_tpu_info()
        cap = getattr(info, "vmem_capacity_bytes", 0) or 0
        if cap > 0:
            return int(min(cap * 3 // 4, 96 << 20))
    except Exception:
        pass
    return default


# ---------------------------------------------------------------------------
# Linear (x @ W + b), 2-D (row, col) tiled with padded/masked last tiles
# ---------------------------------------------------------------------------

def _linear_kernel(x_ref, w_ref, b_ref, o_ref):
    acc = jnp.dot(x_ref[...], w_ref[...], preferred_element_type=jnp.float32)
    o_ref[...] = (acc + b_ref[...]).astype(o_ref.dtype)


def _linear(x2d, w, b, *, out_dtype=None, vmem_limit=None):
    m, k = x2d.shape
    n = w.shape[1]
    out_dtype = out_dtype or x2d.dtype
    vmem_limit = int(vmem_limit or _vmem_limit_bytes())

    itm_in = jnp.dtype(x2d.dtype).itemsize
    itm_out = jnp.dtype(out_dtype).itemsize

    # 512-target tiles (mem-bound roofline sweet spot); shrink (keeping the
    # (8, 128) divisibility) until the double-buffered blocks fit ~half the
    # scoped VMEM budget.  pl.cdiv grids tolerate non-divisible m / n.
    tm = m if m <= 512 else 512
    tn = n if n <= 512 else 512

    def blocks_bytes(tm_, tn_):
        return 2 * (tm_ * k * itm_in + k * tn_ * itm_in + tn_ * itm_in
                    + tm_ * tn_ * itm_out)

    budget = vmem_limit // 2
    while blocks_bytes(tm, tn) > budget and tm > 8:
        tm = max(8, (tm // 2) // 8 * 8)
    while blocks_bytes(tm, tn) > budget and tn > 128:
        tn = max(128, (tn // 2) // 128 * 128)

    grid = (pl.cdiv(m, tm), pl.cdiv(n, tn))
    flops = 2 * m * k * n
    bytes_acc = (m * k + k * n + n) * itm_in + m * n * itm_out

    return pl.pallas_call(
        _linear_kernel,
        grid=grid,
        in_specs=[
            pl.BlockSpec((tm, k), lambda i, j: (i, 0)),
            pl.BlockSpec((k, tn), lambda i, j: (0, j)),
            pl.BlockSpec((1, tn), lambda i, j: (0, j)),
        ],
        out_specs=pl.BlockSpec((tm, tn), lambda i, j: (i, j)),
        out_shape=jax.ShapeDtypeStruct((m, n), out_dtype),
        compiler_params=pltpu.CompilerParams(
            dimension_semantics=("parallel", "parallel"),
            vmem_limit_bytes=vmem_limit),
        cost_estimate=pl.CostEstimate(
            flops=int(flops), transcendentals=0, bytes_accessed=int(bytes_acc)),
    )(x2d, w, b.reshape(1, n))


# ---------------------------------------------------------------------------
# Mask-unit attention: GB (batch, window) groups per grid step, all heads.
# Input layout is channel-major (3*heads, G, L, hd) so per-head slabs are
# full-extent (L, hd) tiles -> no lane-crossing slices inside the kernel.
# ---------------------------------------------------------------------------

def _mua_attn_kernel(qkv_ref, o_ref, *, heads, q_stride, scale):
    _, _, L, hd = qkv_ref.shape        # (3*heads, GB, L, hd)
    Lq = L // q_stride

    for h in range(heads):
        q = qkv_ref[h]                 # (GB, L, hd) -- aligned, no relayout
        k = qkv_ref[heads + h]
        v = qkv_ref[2 * heads + h]

        # q max-pool over the (q_stride, Lq) split of L (q_stride outer),
        # matching view(..., q_stride, L//q_stride, hd).amax(dim=q_stride).
        qp = q[:, 0:Lq, :]
        for s in range(1, q_stride):
            qp = jnp.maximum(qp, q[:, s * Lq:(s + 1) * Lq, :])

        # scores = qp @ k^T batched over the group dim, f32 accumulation.
        sim = lax.dot_general(qp, k, (((2,), (2,)), ((0,), (0,))),
                              preferred_element_type=jnp.float32)  # (GB, Lq, L)
        sim = sim * scale
        m = jnp.max(sim, axis=-1, keepdims=True)
        p = jnp.exp(sim - m)
        denom = jnp.sum(p, axis=-1, keepdims=True)

        oh = lax.dot_general(p.astype(v.dtype), v, (((2,), (1,)), ((0,), (0,))),
                             preferred_element_type=jnp.float32)   # (GB, Lq, hd)
        oh = oh * pl.reciprocal(denom, approx=False)

        # Write this head's slab straight into the lane-dense output tile
        # (no trailing concatenate; bounds each head's live range).
        o_ref[:, :, h * hd:(h + 1) * hd] = oh.astype(o_ref.dtype)


def _attention(qkv_cf, *, heads, q_stride, dim_out, scale, out_dtype,
               vmem_limit=None):
    # qkv_cf: (3*heads, G, L, hd), G = B * num_windows, rows window-major.
    ch, G, L, hd = qkv_cf.shape
    Lq = L // q_stride
    vmem_limit = int(vmem_limit or _vmem_limit_bytes())
    itm_in = jnp.dtype(qkv_cf.dtype).itemsize
    itm_out = jnp.dtype(out_dtype).itemsize

    # Per-group VMEM footprint (lane/sublane padded, double-buffered in & out,
    # plus per-head f32 intermediates) -> pick the largest GB that fits ~60%
    # of the scoped limit so grid-step overhead is amortized.  cdiv grid masks
    # the last (partial) group block, so GB need not divide G.
    in_pg = ch * _round_up(L, 8) * _round_up(hd, 128) * itm_in
    out_pg = _round_up(Lq, 8) * _round_up(dim_out, 128) * itm_out
    live_pg = (_round_up(Lq, 8) * _round_up(L, 128)
               + 2 * _round_up(L, 8) * _round_up(hd, 128)
               + 2 * _round_up(Lq, 8) * _round_up(hd, 128)) * 4
    per_group = 2 * (in_pg + out_pg) + live_pg
    budget = int(vmem_limit * 0.6)
    GB = int(max(1, min(G, budget // max(per_group, 1), 1024)))

    kernel = functools.partial(_mua_attn_kernel, heads=heads,
                               q_stride=q_stride, scale=scale)

    flops = 4 * G * heads * Lq * L * hd          # two matmuls per head
    transc = G * heads * Lq * L                  # exp()
    bytes_acc = qkv_cf.size * itm_in + G * Lq * dim_out * itm_out

    return pl.pallas_call(
        kernel,
        grid=(pl.cdiv(G, GB),),
        in_specs=[pl.BlockSpec((ch, GB, L, hd), lambda g: (0, g, 0, 0))],
        out_specs=pl.BlockSpec((GB, Lq, dim_out), lambda g: (g, 0, 0)),
        out_shape=jax.ShapeDtypeStruct((G, Lq, dim_out), out_dtype),
        compiler_params=pltpu.CompilerParams(
            dimension_semantics=("parallel",),
            vmem_limit_bytes=vmem_limit),
        cost_estimate=pl.CostEstimate(
            flops=int(flops), transcendentals=int(transc),
            bytes_accessed=int(bytes_acc)),
    )(qkv_cf)


# ---------------------------------------------------------------------------
# Module forward
# ---------------------------------------------------------------------------

def mask_unit_attention(x, params, *, heads, q_stride, window_size,
                        use_mask_unit_attn, compute_dtype=None):
    B, N, dim = x.shape
    wqkv, bqkv, wproj, bproj = params
    dim_out = wproj.shape[1]
    hd = dim_out // heads
    scale = hd ** (-0.5)
    compute_dtype = compute_dtype or x.dtype
    vmem_limit = _vmem_limit_bytes()

    W = N // (q_stride * window_size) if use_mask_unit_attn else 1
    L = N // W            # tokens per window
    Lq = L // q_stride    # pooled query tokens per window
    G = B * W

    # 1) Window-major token reorder once, on the smallest tensor (x).
    #    PyTorch's reshape splits N as (L, W) with W fastest.
    xw = x.reshape(B, L, W, dim)
    xw = jnp.transpose(xw, (0, 2, 1, 3)).reshape(G * L, dim)   # rows: (b, w, l)

    # 2) qkv projection (tiled Pallas matmul), emitted directly in the
    #    attention compute dtype (bf16 halves the HBM traffic of the
    #    mem-bound attention stage; accumulation stays f32 in-kernel).
    qkv = _linear(xw, wqkv, bqkv, out_dtype=compute_dtype, vmem_limit=vmem_limit)

    # 3) One XLA transpose to channel-major (3*heads, G, L, hd) so the kernel
    #    gets 128-lane-aligned, full-extent per-head slabs (no relayouts).
    qkv = qkv.reshape(G, L, 3, heads, hd)
    qkv_cf = jnp.transpose(qkv, (2, 3, 0, 1, 4)).reshape(3 * heads, G, L, hd)

    # 4) Attention: GB groups per grid step, all heads per step.
    o = _attention(qkv_cf, heads=heads, q_stride=q_stride, dim_out=dim_out,
                   scale=scale, out_dtype=x.dtype, vmem_limit=vmem_limit)

    # 5) Back to the module's token order (lq, w) with w fastest; this is the
    #    smallest activation in the chain.  Channels already (heads, hd).
    o = o.reshape(B, W, Lq, dim_out)
    o = jnp.transpose(o, (0, 2, 1, 3)).reshape(B * Lq * W, dim_out)

    # 6) Output projection.
    out = _linear(o, wproj, bproj, vmem_limit=vmem_limit)
    return out.reshape(B, Lq * W, dim_out)


# ---------------------------------------------------------------------------
# Pure-JAX reference (mirrors the PyTorch forward exactly)
# ---------------------------------------------------------------------------

def reference(x, params, *, heads, q_stride, window_size, use_mask_unit_attn):
    B, N, dim = x.shape
    wqkv, bqkv, wproj, bproj = params
    dim_out = wproj.shape[1]
    hd = dim_out // heads
    scale = hd ** (-0.5)
    num_windows = N // (q_stride * window_size) if use_mask_unit_attn else 1
    L = N // num_windows

    qkv = x.reshape(B * N, dim) @ wqkv + bqkv
    qkv = qkv.reshape(B, L, num_windows, 3, heads, hd)
    qkv = jnp.transpose(qkv, (3, 0, 4, 2, 1, 5))
    q, k, v = qkv[0], qkv[1], qkv[2]
    if q_stride > 1:
        q = q.reshape(B, heads, num_windows, q_stride, L // q_stride, hd).max(axis=3)
    attn = jax.nn.softmax(
        jnp.einsum("bhwqd,bhwkd->bhwqk", q, k) * scale, axis=-1)
    o = jnp.einsum("bhwqk,bhwkd->bhwqd", attn, v)
    o = jnp.transpose(o, (0, 3, 2, 1, 4)).reshape(B, -1, dim_out)
    return (o.reshape(-1, dim_out) @ wproj + bproj).reshape(B, -1, dim_out)


# ---------------------------------------------------------------------------

if __name__ == "__main__":
    # Module config (small, consistent with the PyTorch __init__)
    dim = 32
    dim_out = 32
    heads = 2
    q_stride = 2
    window_size = 4
    use_mask_unit_attn = True

    B, N = 2, 16  # N must be divisible by q_stride * window_size

    key = jax.random.PRNGKey(0)
    kx, kw1, kb1, kw2, kb2 = jax.random.split(key, 5)

    x = jax.random.normal(kx, (B, N, dim), dtype=jnp.float32)

    # Deterministic parameter init (stored already transposed: (in, out))
    wqkv = jax.random.normal(kw1, (dim, 3 * dim_out), dtype=jnp.float32) * 0.05
    bqkv = jax.random.normal(kb1, (3 * dim_out,), dtype=jnp.float32) * 0.05
    wproj = jax.random.normal(kw2, (dim_out, dim_out), dtype=jnp.float32) * 0.05
    bproj = jax.random.normal(kb2, (dim_out,), dtype=jnp.float32) * 0.05
    params = (wqkv, bqkv, wproj, bproj)

    ref = reference(
        x, params, heads=heads, q_stride=q_stride,
        window_size=window_size, use_mask_unit_attn=use_mask_unit_attn)

    # f32 path: tight tolerance against the reference.
    out = mask_unit_attention(
        x, params, heads=heads, q_stride=q_stride,
        window_size=window_size, use_mask_unit_attn=use_mask_unit_attn)
    jax.block_until_ready(out)
    assert out.shape == (B, N // q_stride, dim_out), out.shape
    assert jnp.allclose(out, ref, atol=1e-4, rtol=1e-4), \
        float(jnp.max(jnp.abs(out - ref)))

    # bf16 qkv path (halves HBM traffic of the mem-bound attention stage);
    # softmax and all accumulations remain f32, so only input rounding differs.
    out_bf16 = mask_unit_attention(
        x, params, heads=heads, q_stride=q_stride,
        window_size=window_size, use_mask_unit_attn=use_mask_unit_attn,
        compute_dtype=jnp.bfloat16)
    jax.block_until_ready(out_bf16)
    assert jnp.allclose(out_bf16, ref, atol=1e-2, rtol=1e-2), \
        float(jnp.max(jnp.abs(out_bf16 - ref)))

    print("KERNEL_OK")
</pallas_src>

<mosaic_0001>
module attributes {stable_mosaic.version = 11 : i64} {
  func.func @_linear_kernel(%arg0: i32, %arg1: i32, %arg2: memref<32x32xf32, #tpu.memory_space<vmem>>, %arg3: memref<32x96xf32, #tpu.memory_space<vmem>>, %arg4: memref<1x96xf32, #tpu.memory_space<vmem>>, %arg5: memref<32x96xf32, #tpu.memory_space<vmem>>) attributes {dimension_semantics = [#tpu.dimension_semantics<parallel>, #tpu.dimension_semantics<parallel>], iteration_bounds = array<i64: 1, 1>, scalar_prefetch = 0 : i64, scratch_operands = 0 : i64, tpu.core_type = #tpu.core_type<tc>, window_params = [{transform_indices = @transform_0, window_bounds = array<i64: 32, 32>}, {transform_indices = @transform_1, window_bounds = array<i64: 32, 96>}, {transform_indices = @transform_2, window_bounds = array<i64: 1, 96>}, {transform_indices = @transform_3, window_bounds = array<i64: 32, 96>}]} {
    %c0 = arith.constant 0 : index
    %c0_0 = arith.constant 0 : index
    %0 = vector.load %arg2[%c0, %c0_0] : memref<32x32xf32, #tpu.memory_space<vmem>>, vector<32x32xf32>
    %c0_1 = arith.constant 0 : index
    %c0_2 = arith.constant 0 : index
    %1 = vector.load %arg3[%c0_1, %c0_2] : memref<32x96xf32, #tpu.memory_space<vmem>>, vector<32x96xf32>
    %cst = arith.constant dense<0.000000e+00> : vector<32x96xf32>
    %2 = tpu.matmul %0, %1, %cst {dimension_numbers = #tpu.dot_dimension_numbers<[1], [0], [0], [1], [0, 0, 1, 1], [], []>} : vector<32x32xf32>, vector<32x96xf32>, vector<32x96xf32> -> vector<32x96xf32>
    %c0_3 = arith.constant 0 : index
    %c0_4 = arith.constant 0 : index
    %3 = vector.load %arg4[%c0_3, %c0_4] : memref<1x96xf32, #tpu.memory_space<vmem>>, vector<1x96xf32>
    %4 = vector.broadcast %3 : vector<1x96xf32> to vector<32x96xf32>
    %5 = arith.addf %2, %4 : vector<32x96xf32>
    %c0_5 = arith.constant 0 : index
    %c0_6 = arith.constant 0 : index
    %6 = vector.load %arg5[%c0_5, %c0_6] : memref<32x96xf32, #tpu.memory_space<vmem>>, vector<32x96xf32>
    tpu.vector_store %arg5[%c0_5, %c0_6], %5 {strides = array<i32>} : memref<32x96xf32, #tpu.memory_space<vmem>>, vector<32x96xf32>,
    return
  }
  func.func @transform_0(%arg0: i32, %arg1: i32) -> (i32, i32) {
    %c0_i32 = arith.constant 0 : i32
    %c0_i32_0 = arith.constant 0 : i32
    return %arg0, %c0_i32 : i32, i32
  }
  func.func @transform_1(%arg0: i32, %arg1: i32) -> (i32, i32) {
    %c0_i32 = arith.constant 0 : i32
    %c0_i32_0 = arith.constant 0 : i32
    return %c0_i32, %arg1 : i32, i32
  }
  func.func @transform_2(%arg0: i32, %arg1: i32) -> (i32, i32) {
    %c0_i32 = arith.constant 0 : i32
    %c0_i32_0 = arith.constant 0 : i32
    return %c0_i32, %arg1 : i32, i32
  }
  func.func @transform_3(%arg0: i32, %arg1: i32) -> (i32, i32) {
    %c0_i32 = arith.constant 0 : i32
    return %arg0, %arg1 : i32, i32
  }
}

</mosaic_0001>

<bundles_post_ra>
// kernel: tpu_custom_call.1
= control target key start
LH: loop header
LB: loop body
LE: loop exit
PB: predicated region body
PF: predicated region fallthrough
CT: control target
= control target key end

     0   :  { %8 = vsyncpa [#allocation3], 0  ;;  %s331_s0 = inlined_call_operand.hbm [shape: f32[32,32], index: 0, kind: input, shape index: {}]   ;;  %s332_s1 = inlined_call_operand.hbm [shape: f32[32,96], index: 1, kind: input, shape index: {}]   ;;  %s333_s2 = inlined_call_operand.vmem [shape: f32[1,96], index: 2, kind: input, shape index: {}]   ;;  %s334_s3 = inlined_call_operand.hbm [shape: f32[32,96], index: 3, kind: output, shape index: {}]  }
   0x1   :  { %9 = vsyncpa [#allocation6], 0 }
   0x2   :  { %10 = vsyncpa [#allocation4], 0  ;;  %s285_s12 = smov [#allocation2]  }
   0x3   :  { %s16_s13 = sshll.u32 %s285_s12, 4  ;;  %s17_s13 = int_to_ptr.vmem [resolvable:$true] %s16_s13 }
   0x4   :  { %s227_s14 = scalar_lea.vmem %s17_s13, 512  ;;  %p232_p1 = scmp.lt.s32.totalorder %s17_s13, %s17_s13 }
   0x5   :  { %p228_p0 = scmp.ne.s32.totalorder %s17_s13, %s227_s14  ;;  %p233_p2 = scmp.lt.s32.totalorder %s227_s14, %s227_s14 }
   0x7   :  { %p234_p3 = por %p233_p2, %p232_p1 }
   0x9   :  { %p235_p4 = pnand %p234_p3, %p228_p0 }
   0xb   :  { %238 = shalt.err (!%p235_p4)
}
   0xc   :  { %s286_s15 = smov 128   ;;  %s287_s16 = smov 8  }
   0xd   :  { %22 = dma.hbm_to_vmem [thread:$0]  %s331_s0, 512, %s17_s13, [#allocation3], %s286_s15, %s286_s15, %s287_s16  }
   0xe   :  { %s288_s19 = smov [#allocation5]  }
   0xf   :  { %s28_s20 = sshll.u32 %s288_s19, 4  ;;  %s29_s20 = int_to_ptr.vmem [resolvable:$true] %s28_s20 }
  0x10   :  { %s247_s21 = scalar_lea.vmem %s29_s20, 512  ;;  %p252_p6 = scmp.lt.s32.totalorder %s29_s20, %s29_s20 }
  0x11   :  { %p248_p5 = scmp.ne.s32.totalorder %s29_s20, %s247_s21  ;;  %p253_p7 = scmp.lt.s32.totalorder %s247_s21, %s247_s21 }
  0x13   :  { %p254_p8 = por %p253_p7, %p252_p6 }
  0x15   :  { %p255_p9 = pnand %p254_p8, %p248_p5 }
  0x17   :  { %258 = shalt.err (!%p255_p9)
}
  0x18   :  { %34 = dma.hbm_to_vmem [thread:$0]  %s332_s1, 512, %s29_s20, [#allocation6], %s286_s15, %s286_s15, %s287_s16  }
  0x19   :  { %279 = dma.done.wait [#allocation3], 512  }
  0x1a   :  { %280 = vsyncadd [#allocation3], 4294966784 }
  0x1b   :  { %281 = dma.done.wait [#allocation6], 512  }
  0x1c   :  { %282 = vsyncadd [#allocation6], 4294966784  ;;  %v50_v0 = vld [vmem:[#allocation5 + $0x18] sm:$0xff]  ;;  %v49_v1 = vld [vmem:[#allocation5 + $0x10] sm:$0xff]  ;;  %vm58_vm0 = vcmask 261120   ;;  %vm156_vm1 = vcmask 785408  }
  0x1d   :  { %192 = vmatprep.subr.mxu0 %v50_v0  ;;  %206 = vmatprep.subr.mxu1 %v50_v0  ;;  %v48_v2 = vld [vmem:[#allocation5 + $0x8] sm:$0xff]  ;;  %v47_v3 = vld [vmem:[#allocation5] sm:$0xff]  ;;  %v45_v5 = vld [vmem:[#allocation2 + $0x10] sm:$0xff]  ;;  %s289_s24 = smov [#allocation7]  }
  0x1e   :  { %193 = vmatpush3.msra.mxu0 %v50_v0  ;;  %210 = vmatpush3.msra.mxu1 %v50_v0  ;;  %v43_v4 = vld [vmem:[#allocation2] sm:$0xff]  ;;  %v44_v6 = vld [vmem:[#allocation2 + $0x8] sm:$0xff]  ;;  %v46_v7 = vld [vmem:[#allocation2 + $0x18] sm:$0xff]  ;;  %s166_s25 = sshll.u32 %s289_s24, 4  ;;  %s167_s25 = int_to_ptr.vmem [resolvable:$true] %s166_s25 }
  0x1f   :  { %194 = vmatprep.subr.mxu0 %v49_v1  ;;  %207 = vmatprep.subr.mxu1 %v49_v1  ;;  %v179_v8 = vld [vmem:[%s333_s2] ss:$0 sm:$0xff]  ;;  %s259_s26 = scalar_lea.vmem %s167_s25, 512  ;;  %p264_p11 = scmp.lt.s32.totalorder %s167_s25, %s167_s25 }
  0x20   :  { %195 = vmatpush3.msra.mxu0 %v49_v1  ;;  %211 = vmatpush3.msra.mxu1 %v49_v1  ;;  %p260_p10 = scmp.ne.s32.totalorder %s167_s25, %s259_s26  ;;  %p265_p12 = scmp.lt.s32.totalorder %s259_s26, %s259_s26 }
  0x21   :  { %196 = vmatprep.subr.mxu0 %v48_v2  ;;  %208 = vmatprep.subr.mxu1 %v48_v2 }
  0x22   :  { %197 = vmatpush3.msra.mxu0 %v48_v2  ;;  %212 = vmatpush3.msra.mxu1 %v48_v2  ;;  %p266_p13 = por %p265_p12, %p264_p11 }
  0x23   :  { %198 = vmatprep.subr.mxu0 %v47_v3  ;;  %209 = vmatprep.subr.mxu1 %v47_v3 }
  0x24   :  { %199 = vmatpush3.msra.mxu0 %v47_v3  ;;  %213 = vmatpush3.msra.mxu1 %v47_v3  ;;  %p267_p0 = pnand %p266_p13, %p260_p10 }
  0x25   :  { %200 = vmatprep.mubr.msk.f32.mxu0 %vm58_vm0, %v43_v4  ;;  %203 = vmatprep.mubr.msk.f32.mxu1 %vm58_vm0, %v45_v5 }
  0x26   :  { %201 = vmatmul.mubr.msk.f32.vlgmr.msra.gmra.mxu0 %vm58_vm0, %v44_v6  ;;  %204 = vmatmul.mubr.msk.f32.vlgmr.msra.gmra.mxu1 %vm58_vm0, %v46_v7 }
  0xe6   :  { %v202_v9 = vpop.f32.mrf.mxu0  ;;  %v205_v10 = vpop.f32.mrf.mxu1 }
  0xe7   :  { %v143_v11 = vadd.f32 %v202_v9, %v179_v8  ;;  %v153_v12 = vadd.f32 %v205_v10, %v179_v8 }
  0xe8   :  { %v137_v13 = vpop.f32.mrf.mxu0  ;;  %v147_v14 = vpop.f32.mrf.mxu1 }
  0xe9   :  { %158 = vst.msk [vmem:[#allocation7 + $0x8] sm:$0xff] %vm156_vm1, %v143_v11  ;;  %160 = vst.msk [vmem:[#allocation7 + $0x18] sm:$0xff] %vm156_vm1, %v153_v12  ;;  %v138_v15 = vadd.f32 %v179_v8, %v137_v13  ;;  %v148_v16 = vadd.f32 %v179_v8, %v147_v14 }
  0xeb   :  { %157 = vst.msk [vmem:[#allocation7] sm:$0xff] %vm156_vm1, %v138_v15  ;;  %159 = vst.msk [vmem:[#allocation7 + $0x10] sm:$0xff] %vm156_vm1, %v148_v16 }
  0xec   :  { %270 = shalt.err (!%p267_p0)
}
  0xed   :  { %172 = dma.vmem_to_hbm [thread:$0]  %s167_s25, 512, %s334_s3, [#allocation4], %s286_s15, %s286_s15, %s287_s16  }
  0xee   :  { %283 = dma.done.wait [#allocation4], 512  }
  0xef   :  { %284 = vsyncadd [#allocation4], 4294966784 }
  0xf0   :  { %176 = vsyncpa [#allocation3], 1 }
  0xf1   :  { %177 = vsyncpa [#allocation6], 1 }
  0xf2   :  { %178 = vsyncpa [#allocation4], 1 }

</bundles_post_ra>
